<compile_context>
chip_gen: v7x
topology: tpu7x:2x2x1
jax: 0.10.0
libtpu: 0.0.40
codegen_flags: <defaults>
</compile_context>

<pallas_src>
import jax
import jax.numpy as jnp
from jax.experimental import pallas as pl
from jax.experimental.pallas import tpu as pltpu

SHIFTS = (-2, -1, 0, 1)  # keys of range(-2, 2) in the ModuleDict


def _round_up(x: int, m: int) -> int:
    return ((x + m - 1) // m) * m


def _make_kernel(s_orig: int):
    """Build the per-tile kernel; s_orig is the *unpadded* length of the rolled axis."""

    def att_pred_kernel(w_ref, x_ref, o_ref):
        # w_ref: (4,) scalar weights in SMEM; x_ref/o_ref: (TB, S_pad) tiles in VMEM.
        x = x_ref[...].astype(jnp.float32)                 # (TB, S_pad)
        tb, s_pad = x.shape
        col = jax.lax.broadcasted_iota(jnp.int32, (tb, s_pad), 1)

        # Hoist the scalar SMEM reads out of the (unrolled) shift loop.
        w = [w_ref[idx] for idx in range(len(SHIFTS))]

        acc = jnp.zeros((tb, s_pad), jnp.float32)
        for idx, i in enumerate(SHIFTS):
            # torch.roll(x, shifts=i, dims=-1); negative shifts are rewritten
            # as the equivalent non-negative lane rotation (wrapped lanes are
            # zeroed by the boundary mask below, so this is exact).
            shift = i % s_pad
            shifted = pltpu.roll(x, shift, 1) if shift != 0 else x
            if i < 0:
                # zero positions [i:] of the *original* axis -> keep s < s_orig + i
                shifted = jnp.where(col < (s_orig + i), shifted, 0.0)
            elif i > 0:
                # zero positions [:i] -> keep s >= i
                shifted = jnp.where(col >= i, shifted, 0.0)
            acc = acc + w[idx] * shifted

        o_ref[...] = acc.astype(o_ref.dtype)

    return att_pred_kernel


def att_pred_forward(prev_probs, weights, *, block_rows=256,
                     vmem_limit_bytes=64 * 1024 * 1024):
    """prev_probs: (..., S) float; weights: (4,) f32 (one scalar per shift).

    Returns (..., S, 1) f32, matching the PyTorch module's output shape.
    """
    orig_shape = prev_probs.shape
    S = orig_shape[-1]

    # Fold all leading dims into a row axis; keep the rolled axis S whole.
    x2d = prev_probs.reshape(-1, S).astype(jnp.float32)
    R = x2d.shape[0]

    # Lane-dense S (multiple of 128) and sublane-dense rows (multiple of 8).
    S_pad = _round_up(S, 128)

    # Row-tile size: multiple of 8, capped so double-buffered (in + out)
    # stays small enough for the scoped VMEM limit on v5e/v6e/v7x.
    vmem_budget = 16 * 1024 * 1024                       # 2 bufs x (in + out)
    max_tb = max(8, (vmem_budget // (4 * 4 * S_pad)) // 8 * 8)
    TB = min(_round_up(block_rows, 8), max_tb, _round_up(R, 8))
    R_pad = _round_up(R, TB)

    if (R_pad, S_pad) != (R, S):
        x2d = jnp.pad(x2d, ((0, R_pad - R), (0, S_pad - S)))

    grid = (R_pad // TB,)

    out = pl.pallas_call(
        _make_kernel(S),
        out_shape=jax.ShapeDtypeStruct((R_pad, S_pad), jnp.float32),
        grid=grid,
        in_specs=[
            pl.BlockSpec(memory_space=pltpu.MemorySpace.SMEM),       # weights (4,)
            pl.BlockSpec((TB, S_pad), lambda i: (i, 0)),             # prev_probs tile
        ],
        out_specs=pl.BlockSpec((TB, S_pad), lambda i: (i, 0)),
        compiler_params=pltpu.CompilerParams(
            dimension_semantics=("parallel",),      # megacore-shard row tiles (v7x)
            vmem_limit_bytes=vmem_limit_bytes,
        ),
    )(weights.astype(jnp.float32), x2d)

    out = out[:R, :S].reshape(orig_shape)
    return out[..., None]  # unsqueeze(-1): pure glue, done outside the kernel


def reference_forward(prev_probs, weights):
    """Pure-JAX replica of the PyTorch forward, for validation."""
    S = prev_probs.shape[-1]
    col = jnp.arange(S)
    out = None
    for idx, i in enumerate(SHIFTS):
        shifted = jnp.roll(prev_probs, i, axis=-1)
        if i < 0:
            shifted = jnp.where(col < (S + i), shifted, 0.0)
        elif i > 0:
            shifted = jnp.where(col >= i, shifted, 0.0)
        term = weights[idx] * shifted[..., None]
        out = term if out is None else out + term
    return out


if __name__ == "__main__":
    key = jax.random.PRNGKey(0)
    k_x1, k_x2, k_w = jax.random.split(key, 3)

    # NOTE: the PyTorch __init__ zeroes the 4 Linear(1,1,bias=False) weights,
    # which would make the output identically zero. We keep the same shapes
    # ((1,1) scalar per shift, flattened to (4,)) but use deterministic
    # nonzero values so the kernel is actually exercised.
    weights = jax.random.normal(k_w, (len(SHIFTS),), dtype=jnp.float32)

    # Case 1: simple aligned shape (B, S) = (2, 128).
    x1 = jax.random.uniform(k_x1, (2, 128), dtype=jnp.float32)
    out1 = jax.block_until_ready(att_pred_forward(x1, weights))
    exp1 = reference_forward(x1, weights)
    assert out1.shape == (2, 128, 1), out1.shape
    assert jnp.allclose(out1, exp1, atol=1e-5, rtol=1e-5), (
        float(jnp.max(jnp.abs(out1 - exp1)))
    )

    # Case 2: unaligned, multi-dim leading shape -> exercises the row-fold
    # and the S/row padding paths.
    x2 = jax.random.uniform(k_x2, (3, 5, 100), dtype=jnp.float32)
    out2 = jax.block_until_ready(att_pred_forward(x2, weights))
    exp2 = reference_forward(x2, weights)
    assert out2.shape == (3, 5, 100, 1), out2.shape
    assert jnp.allclose(out2, exp2, atol=1e-5, rtol=1e-5), (
        float(jnp.max(jnp.abs(out2 - exp2)))
    )

    print("KERNEL_OK")
</pallas_src>

<mosaic_0001>
module attributes {stable_mosaic.version = 11 : i64} {
  func.func @att_pred_kernel(%arg0: i32, %arg1: memref<4xf32, #tpu.memory_space<smem>>, %arg2: memref<8x128xf32, #tpu.memory_space<vmem>>, %arg3: memref<8x128xf32, #tpu.memory_space<vmem>>) attributes {dimension_semantics = [#tpu.dimension_semantics<parallel>], iteration_bounds = array<i64: 1>, scalar_prefetch = 0 : i64, scratch_operands = 0 : i64, tpu.core_type = #tpu.core_type<tc>, window_params = [{transform_indices = @transform_0, window_bounds = array<i64: 4>}, {transform_indices = @transform_1, window_bounds = array<i64: 8, 128>}, {transform_indices = @transform_2, window_bounds = array<i64: 8, 128>}]} {
    %c0 = arith.constant 0 : index
    %c0_0 = arith.constant 0 : index
    %0 = vector.load %arg2[%c0, %c0_0] : memref<8x128xf32, #tpu.memory_space<vmem>>, vector<8x128xf32>
    %1 = tpu.iota {dimensions = array<i32: 1>} : vector<8x128xi32>
    %c0_1 = arith.constant 0 : index
    %2 = memref.load %arg1[%c0_1] : memref<4xf32, #tpu.memory_space<smem>>
    %c1 = arith.constant 1 : index
    %3 = memref.load %arg1[%c1] : memref<4xf32, #tpu.memory_space<smem>>
    %c2 = arith.constant 2 : index
    %4 = memref.load %arg1[%c2] : memref<4xf32, #tpu.memory_space<smem>>
    %c3 = arith.constant 3 : index
    %5 = memref.load %arg1[%c3] : memref<4xf32, #tpu.memory_space<smem>>
    %cst = arith.constant 0.000000e+00 : f32
    %6 = vector.broadcast %cst : f32 to vector<8x128xf32>
    %c126_i32 = arith.constant 126 : i32
    %7 = tpu.dynamic_rotate %0 by %c126_i32 dim 1 : vector<8x128xf32>, i32 -> vector<8x128xf32>
    %c126_i32_2 = arith.constant 126 : i32
    %8 = vector.broadcast %c126_i32_2 : i32 to vector<8x128xi32>
    %9 = arith.cmpi slt, %1, %8 : vector<8x128xi32>
    %cst_3 = arith.constant 0.000000e+00 : f32
    %10 = vector.broadcast %cst_3 : f32 to vector<8x128xf32>
    %11 = arith.select %9, %7, %10 : vector<8x128xi1>, vector<8x128xf32>
    %12 = vector.broadcast %2 : f32 to vector<8x128xf32>
    %13 = arith.mulf %12, %11 : vector<8x128xf32>
    %14 = arith.addf %6, %13 : vector<8x128xf32>
    %c127_i32 = arith.constant 127 : i32
    %15 = tpu.dynamic_rotate %0 by %c127_i32 dim 1 : vector<8x128xf32>, i32 -> vector<8x128xf32>
    %c127_i32_4 = arith.constant 127 : i32
    %16 = vector.broadcast %c127_i32_4 : i32 to vector<8x128xi32>
    %17 = arith.cmpi slt, %1, %16 : vector<8x128xi32>
    %cst_5 = arith.constant 0.000000e+00 : f32
    %18 = vector.broadcast %cst_5 : f32 to vector<8x128xf32>
    %19 = arith.select %17, %15, %18 : vector<8x128xi1>, vector<8x128xf32>
    %20 = vector.broadcast %3 : f32 to vector<8x128xf32>
    %21 = arith.mulf %20, %19 : vector<8x128xf32>
    %22 = arith.addf %14, %21 : vector<8x128xf32>
    %23 = vector.broadcast %4 : f32 to vector<8x128xf32>
    %24 = arith.mulf %23, %0 : vector<8x128xf32>
    %25 = arith.addf %22, %24 : vector<8x128xf32>
    %c1_i32 = arith.constant 1 : i32
    %26 = tpu.dynamic_rotate %0 by %c1_i32 dim 1 : vector<8x128xf32>, i32 -> vector<8x128xf32>
    %c1_i32_6 = arith.constant 1 : i32
    %27 = vector.broadcast %c1_i32_6 : i32 to vector<8x128xi32>
    %28 = arith.cmpi sge, %1, %27 : vector<8x128xi32>
    %cst_7 = arith.constant 0.000000e+00 : f32
    %29 = vector.broadcast %cst_7 : f32 to vector<8x128xf32>
    %30 = arith.select %28, %26, %29 : vector<8x128xi1>, vector<8x128xf32>
    %31 = vector.broadcast %5 : f32 to vector<8x128xf32>
    %32 = arith.mulf %31, %30 : vector<8x128xf32>
    %33 = arith.addf %25, %32 : vector<8x128xf32>
    %c0_8 = arith.constant 0 : index
    %c0_9 = arith.constant 0 : index
    %34 = vector.load %arg3[%c0_8, %c0_9] : memref<8x128xf32, #tpu.memory_space<vmem>>, vector<8x128xf32>
    tpu.vector_store %arg3[%c0_8, %c0_9], %33 {strides = array<i32>} : memref<8x128xf32, #tpu.memory_space<vmem>>, vector<8x128xf32>,
    return
  }
  func.func @transform_0(%arg0: i32) -> i32 {
    %c0_i32 = arith.constant 0 : i32
    %c0_i32_0 = arith.constant 0 : i32
    return %c0_i32 : i32
  }
  func.func @transform_1(%arg0: i32) -> (i32, i32) {
    %c0_i32 = arith.constant 0 : i32
    %c0_i32_0 = arith.constant 0 : i32
    return %arg0, %c0_i32 : i32, i32
  }
  func.func @transform_2(%arg0: i32) -> (i32, i32) {
    %c0_i32 = arith.constant 0 : i32
    %c0_i32_0 = arith.constant 0 : i32
    return %arg0, %c0_i32 : i32, i32
  }
}

</mosaic_0001>

<bundles_post_ra>
// kernel: tpu_custom_call.1
= control target key start
LH: loop header
LB: loop body
LE: loop exit
PB: predicated region body
PF: predicated region fallthrough
CT: control target
= control target key end

     0   :  { %7 = vsyncpa [#allocation5], 0  ;;  %s209_s0 = inlined_call_operand.hbm [shape: f32[4], index: 0, kind: input, shape index: {}]   ;;  %s210_s1 = inlined_call_operand.hbm [shape: f32[8,128], index: 1, kind: input, shape index: {}]   ;;  %s211_s2 = inlined_call_operand.hbm [shape: f32[8,128], index: 2, kind: output, shape index: {}]  }
   0x1   :  { %8 = vsyncpa [#allocation3], 0 }
   0x2   :  { %9 = vsyncpa [#allocation4], 0  ;;  %s92_s11 = scalar_lea.hbm %s209_s0, 16 }
   0x3   :  { %p93_p0 = scmp.ne.s32.totalorder %s209_s0, %s92_s11  ;;  %p96_p1 = scmp.lt.u32.totalorder %s92_s11, %s209_s0 }
   0x5   :  { %p98_p2 = pnand %p96_p1, %p93_p0 }
   0x7   :  { %101 = shalt.err (!%p98_p2)
}
   0x8   :  { %s152_s16 = smov [#allocation2]   ;;  %s153_s19 = smov [#allocation6]  }
   0x9   :  { %17 = dma.hbm_to_smem %s209_s0, 16, %s152_s16, [#allocation5]  }
   0xa   :  { %s24_s20 = sshll.u32 %s153_s19, 4  ;;  %s102_s23 = scalar_lea.hbm %s210_s1, 128  ;;  %s25_s20 = int_to_ptr.vmem [resolvable:$true] %s24_s20 }
   0xb   :  { %p103_p3 = scmp.ne.s32.totalorder %s210_s1, %s102_s23  ;;  %p106_p4 = scmp.lt.u32.totalorder %s102_s23, %s210_s1 }
   0xd   :  { %p108_p5 = pnand %p106_p4, %p103_p3 }
   0xf   :  { %111 = shalt.err (!%p108_p5)
}
  0x10   :  { %s112_s28 = scalar_lea.vmem %s25_s20, 128  ;;  %p117_p7 = scmp.lt.s32.totalorder %s25_s20, %s25_s20 }
  0x11   :  { %p113_p6 = scmp.ne.s32.totalorder %s25_s20, %s112_s28  ;;  %p118_p8 = scmp.lt.s32.totalorder %s112_s28, %s112_s28 }
  0x13   :  { %p119_p9 = por %p118_p8, %p117_p7 }
  0x15   :  { %p120_p10 = pnand %p119_p9, %p113_p6 }
  0x17   :  { %123 = shalt.err (!%p120_p10)
}
  0x18   :  { %27 = dma.hbm_to_vmem [thread:$0]  %s210_s1, 128, %s25_s20, [#allocation3]  }
  0x19   :  { %146 = dma.done.wait [#allocation5], 16  }
  0x1a   :  { %147 = vsyncadd [#allocation5], 4294967280 }
  0x1b   :  { %148 = dma.done.wait [#allocation3], 128  }
  0x1c   :  { %149 = vsyncadd [#allocation3], 4294967168 }
  0x1d   :  { %34 = sfence }
  0x1e   :  { %v35_v0 = vld [vmem:[#allocation6] sm:$0xff]  ;;  %s154_s30 = smov 126   ;;  %s155_s3 = smov 1   ;;  %v36_v1 = vlaneseq }
  0x1f   :  { %42 = vrot.lane.b32.xlu0 %v35_v0, %s154_s30  ;;  %59 = vrot.lane.b32.xlu1 %v35_v0, %s155_s3  ;;  %s156_s4 = smov 127   ;;  %s38_s5 = sld [smem:[#allocation2]] }
  0x20   :  { %s83_s6 = sld [smem:[#allocation2 + $0x1]]  ;;  %s84_s7 = sld [smem:[#allocation2 + $0x2]]  ;;  %v37_v2 = vand.u32 127, %v36_v1 }
  0x21   :  { %s85_s8 = sld [smem:[#allocation2 + $0x3]]  ;;  %s157_s1 = smov [#allocation7]  }
  0x22   :  { %vm44_vm0 = vcmp.lt.s32.totalorder %v37_v2, 126  ;;  %vm51_vm1 = vcmp.lt.s32.totalorder %v37_v2, 127  ;;  %vm61_vm2 = vcmp.ge.s32.totalorder %v37_v2, 1  ;;  %s73_s9 = sshll.u32 %s157_s1, 4  ;;  %s74_s9 = int_to_ptr.vmem [resolvable:$true] %s73_s9 }
  0x23   :  { %49 = vrot.lane.b32.xlu0 %v35_v0, %s156_s4  ;;  %s124_s10 = scalar_lea.vmem %s74_s9, 128  ;;  %p129_p12 = scmp.lt.s32.totalorder %s74_s9, %s74_s9 }
  0x24   :  { %p125_p11 = scmp.ne.s32.totalorder %s74_s9, %s124_s10  ;;  %p130_p13 = scmp.lt.s32.totalorder %s124_s10, %s124_s10 }
  0x25   :  { %v46_v5 = vstv %s38_s5 }
  0x26   :  { %v53_v7 = vstv %s83_s6  ;;  %v56_v8 = vstv %s84_s7  ;;  %p131_p0 = por %p130_p13, %p129_p12 }
  0x27   :  { %v63_v11 = vstv %s85_s8  ;;  %v57_v15 = vmul.f32 %v56_v8, %v35_v0 }
  0x28   :  { %p132_p1 = pnand %p131_p0, %p125_p11 }
  0x91   :  { %v43_v3 = vpop.permute.xlu0 %42  ;;  %v60_v4 = vpop.permute.xlu1 %59 }
  0x92   :  { %v45_v6 = vsel %vm44_vm0, %v43_v3, 0.0  ;;  %v62_v12 = vsel %vm61_vm2, %v60_v4, 0.0 }
  0x93   :  { %v47_v13 = vmul.f32 %v46_v5, %v45_v6  ;;  %v64_v17 = vmul.f32 %v63_v11, %v62_v12 }
  0x95   :  { %v50_v9 = vpop.permute.xlu0 %49 }
  0x96   :  { %v52_v10 = vsel %vm51_vm1, %v50_v9, 0.0 }
  0x97   :  { %v54_v14 = vmul.f32 %v53_v7, %v52_v10 }
  0x99   :  { %v55_v16 = vadd.f32 %v54_v14, %v47_v13 }
  0x9b   :  { %v58_v18 = vadd.f32 %v57_v15, %v55_v16 }
  0x9d   :  { %v65_v19 = vadd.f32 %v64_v17, %v58_v18 }
  0x9f   :  { %66 = vst [vmem:[#allocation7] sm:$0xff] %v65_v19 }
  0xa0   :  { %135 = shalt.err (!%p132_p1)
}
  0xa1   :  { %s136_s13 = scalar_lea.hbm %s211_s2, 128 }
  0xa2   :  { %p137_p2 = scmp.ne.s32.totalorder %s211_s2, %s136_s13  ;;  %p140_p3 = scmp.lt.u32.totalorder %s136_s13, %s211_s2 }
  0xa4   :  { %p142_p4 = pnand %p140_p3, %p137_p2 }
  0xa6   :  { %145 = shalt.err (!%p142_p4)
}
  0xa7   :  { %76 = dma.vmem_to_hbm [thread:$0]  %s74_s9, 128, %s211_s2, [#allocation4]  }
  0xa8   :  { %150 = dma.done.wait [#allocation4], 128  }
  0xa9   :  { %151 = vsyncadd [#allocation4], 4294967168 }
  0xaa   :  { %80 = vsyncpa [#allocation3], 1 }
  0xab   :  { %81 = vsyncpa [#allocation4], 1 }
  0xac   :  { %82 = vsyncpa [#allocation5], 1 }

</bundles_post_ra>
